<compile_context>
chip_gen: v6e
topology: v6e:2x2x1
jax: 0.10.0
libtpu: 0.0.40
codegen_flags: <defaults>
</compile_context>

<pallas_src>
import functools

import jax
import jax.numpy as jnp
from jax.experimental import pallas as pl
from jax.experimental.pallas import tpu as pltpu


def _cdiv(a, b):
    return -(-a // b)


def _spatial_attention_kernel(u_ref, w_ref, out_ref, atten_ref, *, use_mxu, f32_elemwise):
    # u_ref:     (1, C, T)         input tile (one batch element, all channels, T spatial)
    # w_ref:     (C, 1) or (1, C)  1x1-conv weight (column for VPU path, row for MXU path)
    # out_ref:   (1, C, T)         U * sigmoid(q)
    # atten_ref: (1, 1, T)         pre-sigmoid attention map (spaAtten)
    u = u_ref[0]                                                 # (C, T)
    if use_mxu:
        # Large C: (1, C) x (C, T) contraction on the MXU, f32 accumulation.
        q = jnp.dot(w_ref[...], u, preferred_element_type=jnp.float32)   # (1, T) f32
    else:
        # Small C: per-channel multiply (VPU) + sublane reduce (XLU), f32 accumulate.
        # Keeps the MXU / MRF drain off the per-tile critical path entirely.
        w_col = w_ref[...].astype(jnp.float32)                   # (C, 1)
        q = jnp.sum(u.astype(jnp.float32) * w_col, axis=0, keepdims=True)  # (1, T) f32
    s = jax.nn.sigmoid(q)                                        # f32, EUP
    atten_ref[0] = q.astype(atten_ref.dtype)                     # (1, T)
    if f32_elemwise:
        out_ref[0] = (u.astype(jnp.float32) * s).astype(out_ref.dtype)
    else:
        # bf16/f16 VPU path (v6e/v7x): halves VPU ops and live vreg footprint.
        out_ref[0] = u * s.astype(u.dtype)


def _device_params():
    """Per-generation tile budget / VMEM cap / core-count / bf16-VPU capability."""
    kind = ""
    try:
        kind = jax.devices()[0].device_kind.lower()
    except Exception:
        pass
    if "v7" in kind:
        # 64 MiB physical VMEM, 3.2 TB/s HBM, 2 TensorCores.
        return dict(budget=6 << 20, vmem_cap=48 << 20, two_cores=True, bf16_vpu=True)
    if "v6" in kind:
        # 128 MiB physical VMEM, 1.35 TB/s HBM.
        return dict(budget=8 << 20, vmem_cap=64 << 20, two_cores=False, bf16_vpu=True)
    if "v5 lite" in kind or "v5e" in kind or "v5litepod" in kind:
        # 128 MiB VMEM, 0.82 TB/s HBM, no bf16 VPU.
        return dict(budget=2 << 20, vmem_cap=32 << 20, two_cores=False, bf16_vpu=False)
    # Unknown part: conservative settings valid on all generations.
    return dict(budget=4 << 20, vmem_cap=40 << 20, two_cores=False, bf16_vpu=False)


def _pick_spatial_tile(HW, C, itemsize, N, budget, two_cores):
    """Lane-dense spatial tile: multiple of 128 (or full HW), ~budget bytes of input."""
    row_bytes = max(C * itemsize, 1)
    min_tile = 512 if HW >= 512 else 128          # avoid the 128-wide bandwidth cliff
    t_raw = budget // row_bytes
    if t_raw >= HW:
        t = HW
    else:
        t = max(min_tile, (t_raw // 128) * 128)
    # 2-TensorCore parts (v7x): keep the total grid-step count even so both cores
    # get work; on single-core parts (v5e/v6e) splitting only adds step overhead.
    if two_cores and HW > 128 and (N * _cdiv(HW, t)) % 2 == 1:
        t_half = max(128, ((_cdiv(t, 2) + 127) // 128) * 128)
        if t_half < t and (N * _cdiv(HW, t_half)) % 2 == 0:
            t = t_half
    return t


def spatial_attention(U, conv_weight):
    """U: (N, C, H, W); conv_weight: (1, C, 1, 1) (PyTorch Conv2d weight layout)."""
    N, C, H, W = U.shape
    assert conv_weight.shape == (1, C, 1, 1)
    HW = H * W
    dtype = U.dtype
    itemsize = jnp.dtype(dtype).itemsize

    params = _device_params()
    T = _pick_spatial_tile(HW, C, itemsize, N, params["budget"], params["two_cores"])
    n_tiles = _cdiv(HW, T)
    HW_pad = n_tiles * T

    # Lane-dense views (pure layout plumbing; reshaped back after the call).
    U2 = U.reshape(N, C, HW)
    if HW_pad != HW:
        # Zero-pad the tail tile: full unmasked stores, and the padded lanes stay
        # finite through sigmoid (no NaN/Inf in dead lanes).
        U2 = jnp.pad(U2, ((0, 0), (0, 0), (0, HW_pad - HW)))

    # Weight layout / compute path chosen statically from C.
    use_mxu = C > 128
    if use_mxu:
        w_arr = conv_weight.reshape(1, C)
        w_spec = pl.BlockSpec((1, C), lambda b, t: (0, 0))
    else:
        w_arr = conv_weight.reshape(C, 1)
        w_spec = pl.BlockSpec((C, 1), lambda b, t: (0, 0))

    # f32 elementwise path for f32 inputs and for parts without a bf16 VPU (v5e).
    f32_elemwise = (itemsize >= 4) or (not params["bf16_vpu"])

    # VMEM budget: double-buffered in/out tiles + atten + in-kernel f32 temporaries
    # (reduce product / upcast) + slack, clamped to the per-generation cap.
    tile_bytes = C * T * itemsize
    f32_tile_bytes = C * T * 4
    vmem_needed = 4 * tile_bytes + 3 * f32_tile_bytes + 4 * T * 4 + (1 << 20)
    vmem_limit = int(min(max(vmem_needed, 16 << 20), params["vmem_cap"]))

    kernel = functools.partial(
        _spatial_attention_kernel, use_mxu=use_mxu, f32_elemwise=f32_elemwise
    )

    out2, atten2 = pl.pallas_call(
        kernel,
        out_shape=(
            jax.ShapeDtypeStruct((N, C, HW_pad), dtype),   # U * sigmoid(q)
            jax.ShapeDtypeStruct((N, 1, HW_pad), dtype),   # spaAtten (pre-sigmoid)
        ),
        grid=(N, n_tiles),
        in_specs=[
            pl.BlockSpec((1, C, T), lambda b, t: (b, 0, t)),
            w_spec,
        ],
        out_specs=(
            pl.BlockSpec((1, C, T), lambda b, t: (b, 0, t)),
            pl.BlockSpec((1, 1, T), lambda b, t: (b, 0, t)),
        ),
        compiler_params=pltpu.CompilerParams(
            dimension_semantics=("parallel", "parallel"),
            vmem_limit_bytes=vmem_limit,
        ),
    )(U2, w_arr)

    if HW_pad != HW:
        out2 = out2[:, :, :HW]
        atten2 = atten2[:, :, :HW]
    return out2.reshape(N, C, H, W), atten2.reshape(N, H, W)


if __name__ == "__main__":
    # Small shapes consistent with the module: data_length == C (channel dim of NCHW).
    N, C, H, W = 2, 4, 16, 16

    key = jax.random.PRNGKey(0)
    k_u, k_w = jax.random.split(key)
    U = jax.random.normal(k_u, (N, C, H, W), dtype=jnp.float32)
    # Deterministic stand-in for Conv2d(C, 1, 1, bias=False) weight, shape (1, C, 1, 1).
    conv_weight = jax.random.normal(k_w, (1, C, 1, 1), dtype=jnp.float32) * 0.1

    out, spa_atten = spatial_attention(U, conv_weight)
    jax.block_until_ready((out, spa_atten))

    # Pure-JAX reference.
    q_ref = jnp.sum(U * conv_weight, axis=1, keepdims=True)      # (N, 1, H, W)
    out_ref = U * jax.nn.sigmoid(q_ref)
    atten_ref = q_ref[:, 0, :, :]
    assert jnp.allclose(out, out_ref, atol=1e-5, rtol=1e-5)
    assert jnp.allclose(spa_atten, atten_ref, atol=1e-5, rtol=1e-5)

    print("KERNEL_OK")
</pallas_src>

<mosaic_0001>
module attributes {stable_mosaic.version = 11 : i64} {
  func.func @_spatial_attention_kernel(%arg0: i32, %arg1: i32, %arg2: memref<1x4x256xf32, #tpu.memory_space<vmem>>, %arg3: memref<4x1xf32, #tpu.memory_space<vmem>>, %arg4: memref<1x4x256xf32, #tpu.memory_space<vmem>>, %arg5: memref<1x1x256xf32, #tpu.memory_space<vmem>>) attributes {dimension_semantics = [#tpu.dimension_semantics<parallel>, #tpu.dimension_semantics<parallel>], iteration_bounds = array<i64: 2, 1>, scalar_prefetch = 0 : i64, scratch_operands = 0 : i64, tpu.core_type = #tpu.core_type<tc>, window_params = [{transform_indices = @transform_0, window_bounds = array<i64: 1, 4, 256>}, {pipeline_mode = #tpu.pipeline_mode<synchronous>, transform_indices = @transform_1, window_bounds = array<i64: 4, 1>}, {transform_indices = @transform_2, window_bounds = array<i64: 1, 4, 256>}, {transform_indices = @transform_3, window_bounds = array<i64: 1, 1, 256>}]} {
    %c0 = arith.constant 0 : index
    %c0_0 = arith.constant 0 : index
    %c0_1 = arith.constant 0 : index
    %0 = vector.load %arg2[%c0, %c0_0, %c0_1] : memref<1x4x256xf32, #tpu.memory_space<vmem>>, vector<1x4x256xf32>
    %1 = vector.shape_cast %0 : vector<1x4x256xf32> to vector<4x256xf32>
    %c0_2 = arith.constant 0 : index
    %c0_3 = arith.constant 0 : index
    %2 = vector.load %arg3[%c0_2, %c0_3] : memref<4x1xf32, #tpu.memory_space<vmem>>, vector<4x1xf32>
    %3 = vector.broadcast %2 : vector<4x1xf32> to vector<4x256xf32>
    %4 = arith.mulf %1, %3 : vector<4x256xf32>
    %cst = arith.constant dense<0.000000e+00> : vector<256xf32>
    %5 = vector.multi_reduction <add>, %4, %cst [0] : vector<4x256xf32> to vector<256xf32>
    %6 = vector.shape_cast %5 : vector<256xf32> to vector<1x256xf32>
    %7 = arith.negf %6 : vector<1x256xf32>
    %8 = math.exp %7 : vector<1x256xf32>
    %cst_4 = arith.constant 1.000000e+00 : f32
    %9 = vector.broadcast %cst_4 : f32 to vector<1x256xf32>
    %10 = arith.addf %9, %8 : vector<1x256xf32>
    %11 = arith.divf %9, %10 : vector<1x256xf32>
    %c0_5 = arith.constant 0 : index
    %c0_6 = arith.constant 0 : index
    %c0_7 = arith.constant 0 : index
    %12 = vector.load %arg5[%c0_5, %c0_6, %c0_7] : memref<1x1x256xf32, #tpu.memory_space<vmem>>, vector<1x1x256xf32>
    %13 = vector.shape_cast %12 : vector<1x1x256xf32> to vector<1x256xf32>
    %14 = vector.shape_cast %6 : vector<1x256xf32> to vector<1x1x256xf32>
    tpu.vector_store %arg5[%c0_5, %c0_6, %c0_7], %14 {strides = array<i32>} : memref<1x1x256xf32, #tpu.memory_space<vmem>>, vector<1x1x256xf32>,
    %15 = vector.broadcast %11 : vector<1x256xf32> to vector<4x256xf32>
    %16 = arith.mulf %1, %15 : vector<4x256xf32>
    %c0_8 = arith.constant 0 : index
    %c0_9 = arith.constant 0 : index
    %c0_10 = arith.constant 0 : index
    %17 = vector.load %arg4[%c0_8, %c0_9, %c0_10] : memref<1x4x256xf32, #tpu.memory_space<vmem>>, vector<1x4x256xf32>
    %18 = vector.shape_cast %17 : vector<1x4x256xf32> to vector<4x256xf32>
    %19 = vector.shape_cast %16 : vector<4x256xf32> to vector<1x4x256xf32>
    tpu.vector_store %arg4[%c0_8, %c0_9, %c0_10], %19 {strides = array<i32>} : memref<1x4x256xf32, #tpu.memory_space<vmem>>, vector<1x4x256xf32>,
    return
  }
  func.func @transform_0(%arg0: i32, %arg1: i32) -> (i32, i32, i32) {
    %c0_i32 = arith.constant 0 : i32
    %c0_i32_0 = arith.constant 0 : i32
    return %arg0, %c0_i32, %arg1 : i32, i32, i32
  }
  func.func @transform_1(%arg0: i32, %arg1: i32) -> (i32, i32) {
    %c0_i32 = arith.constant 0 : i32
    %c0_i32_0 = arith.constant 0 : i32
    %c0_i32_1 = arith.constant 0 : i32
    return %c0_i32, %c0_i32_0 : i32, i32
  }
  func.func @transform_2(%arg0: i32, %arg1: i32) -> (i32, i32, i32) {
    %c0_i32 = arith.constant 0 : i32
    %c0_i32_0 = arith.constant 0 : i32
    return %arg0, %c0_i32, %arg1 : i32, i32, i32
  }
  func.func @transform_3(%arg0: i32, %arg1: i32) -> (i32, i32, i32) {
    %c0_i32 = arith.constant 0 : i32
    %c0_i32_0 = arith.constant 0 : i32
    return %arg0, %c0_i32, %arg1 : i32, i32, i32
  }
}

</mosaic_0001>

<bundles_post_ra>
// kernel: tpu_custom_call.1
= control target key start
LH: loop header
LB: loop body
LE: loop exit
PB: predicated region body
PF: predicated region fallthrough
CT: control target
= control target key end

     0   :  { %9 = vsyncpa [#allocation3], 0  ;;  %s884_s0 = inlined_call_operand.hbm [shape: f32[2,4,256], index: 0, kind: input, shape index: {}]   ;;  %s885_s1 = inlined_call_operand.vmem [shape: f32[4,1], index: 1, kind: input, shape index: {}]   ;;  %s886_s2 = inlined_call_operand.hbm [shape: f32[2,4,256], index: 2, kind: output, shape index: {0}]   ;;  %s887_s3 = inlined_call_operand.hbm [shape: f32[2,1,256], index: 3, kind: output, shape index: {1}]  }
   0x1   :  { %11 = vsyncpa [#allocation3 + $0x1], 0 }
   0x2   :  { %12 = vsyncpa [#allocation4], 0 }
   0x3   :  { %14 = vsyncpa [#allocation4 + $0x1], 0 }
   0x4   :  { %15 = vsyncpa [#allocation7], 0 }
   0x5   :  { %17 = vsyncpa [#allocation7 + $0x1], 0  ;;  %s721_s12 = smov 0   ;;  %s723_s13 = smov 0  }
   0x6   :  { %s725_s14 = smov 0   ;;  %s727_s15 = smov 0  }
   0x7   :  { %s729_s16 = smov 0   ;;  %s731_s17 = smov 0  }
   0x8 LB: > { %s452_s18 = sadd.s32 4294967295, %s693_s17   ;;  %s453_s19 = sadd.s32 4294967294, %s693_s17   ;;  %s693_s17 = sphi %s731_s17, %s23_s17   ;;  %s689_s16 = sphi %s729_s16, %s899_s16   ;;  %s685_s15 = sphi %s727_s15, %s898_s15   ;;  %s681_s14 = sphi %s725_s14, %s897_s14   ;;  %s677_s13 = sphi %s723_s13, %s896_s13   ;;  %s673_s12 = sphi %s721_s12, %s895_s12  }
   0x9   : > { %s35_s20 = sadd.s32 1, %s689_s16  ;;  %s44_s21 = sadd.s32 1, %s681_s14 }
   0xa   : > { %p37_p0 = scmp.ge.s32.totalorder %s35_s20, 2  ;;  %p51_p1 = scmp.ne.s32.totalorder %s681_s14, %s677_s13 }
   0xb   : > { %p52_p2 = scmp.eq.s32.totalorder %s693_s17, 0  ;;  %p57_p3 = scmp.ne.s32.totalorder %s677_s13, %s673_s12 }
   0xc   : > { %s901_s20 = smov (%p37_p0, %s35_s20), 0  ;;  %p58_p5 = scmp.eq.s32.totalorder %s452_s18, 0 }
   0xd   : > { %p762_p4 = por %p52_p2, %p51_p1  ;;  %s39_s23 = ssub.s32 %s689_s16, %s901_s20 }
   0xe   : > { %p104_p6 = scmp.eq.s32.totalorder %s452_s18, 1  ;;  %p42_p7 = scmp.eq.s32.totalorder %s39_s23, 0 }
   0xf   : > { %p768_p8 = por %p58_p5, %p57_p3  ;;  %p110_p10 = scmp.eq.s32.totalorder %s453_s19, 1 }
  0x10   : > { %p772_p9 = por %p104_p6, %p51_p1  ;;  %p493_p13 = scmp.lt.s32.totalorder %s693_s17, 2 }
  0x11   : > { %s777_s26 = scalar_select %p42_p7, %s681_s14, %s44_s21  }
  0x12   : > { %p779_p11 = por %p110_p10, %p57_p3  ;;  %s161_s28 = sand.u32 1, %s681_s14  }
  0x13   : > { %s456_s29 = sshll.u32 %s161_s28, 3  ;;  %s473_s30 = sshll.u32 %s689_s16, 7 }
  0x14   : > { %s891_s27 = scalar_select %p779_p11, 1, 0 }
  0x15   : > { %s173_s6 = scalar_lea.hbm %s884_s0, %s473_s30  ;;  %s165_s7 = scalar_lea.vmem [#allocation2], %s456_s29 }
  0x16   : > { %s175_s8 = sshll.u32 %s165_s7, 4  ;;  %p792_p0 = pnand %p493_p13, %p762_p4  ;;  %s176_s8 = int_to_ptr.vmem [resolvable:$true] %s175_s8 }
  0x17   : > { %p459_p1 = scmp.ge.s32.totalorder %s693_s17, 1  ;;  %p180_p2 = scmp.lt.s32.totalorder %s693_s17, 3 }
  0x18   : > { %s162_s10 = scalar_lea.sflag [#allocation3], %s161_s28  ;;  %p557_p3 = pneg %p792_p0 }
  0x19   : > { %s568_s11 = scalar_lea.vmem %s176_s8, 128  ;;  %s695_s18 = smov [#allocation2]  }
  0x1a   : > { %p569_p5 = scmp.ne.s32.totalorder %s176_s8, %s568_s11  ;;  %s573_s19 = sshll.u32 %s695_s18, 4  ;;  %s574_s19 = int_to_ptr.vmem [resolvable:$false] %s573_s19 }
  0x1b   : > { %s575_s21 = scalar_lea.vmem %s574_s19, 256  ;;  %p576_p10 = scmp.lt.s32.totalorder %s176_s8, %s574_s19 }
  0x1c   : > { %p571_p6 = pnand %p569_p5, %p557_p3  ;;  %p577_p12 = scmp.lt.s32.totalorder %s575_s21, %s568_s11 }
  0x1e   : > { %p572_p7 = pneg %p571_p6  ;;  %p578_p4 = por %p577_p12, %p576_p10 }
  0x20   : > { %p579_p13 = pnand %p578_p4, %p572_p7 }
  0x22   : > { %582 = shalt.err (!%p579_p13)
}
  0x23   : > { %485 = dma.hbm_to_vmem [thread:$0]  (!%p792_p0), %s173_s6, 128, %s176_s8, %s162_s10  }
  0x24   : > { %p181_p11 = pnand %p459_p1, %p180_p2 }
  0x25   : > { %s807_s22 = sand.u32 (!%p181_p11), 1, %s677_s13  }
  0x26   : > { %184 = sbr.rel (%p181_p11) target bundleno = 242 (0xf2), region = 28  ;;  %s460_s23 = sshll.u32 (!%p181_p11), %s807_s22, 3 }
  0x27   : > { %s187_s28 = scalar_lea.sflag (!%p181_p11), [#allocation3], %s807_s22  ;;  %s190_s29 = scalar_lea.vmem (!%p181_p11), [#allocation2], %s460_s23 }
  0x2b   : > { %660 = dma.done.wait (%p768_p8), %s187_s28, 128  }
  0x2c   : > { %662 = vsyncadd (%p768_p8), %s187_s28, 4294967168  ;;  %v696_v0 = vmov 0   ;;  %v222_v1 = vld [vmem:[%s885_s1] sm:$0xf]  ;;  %v697_v2 = vmov 839922192   ;;  %v230_v4 = vlaneseq }
  0x2d   : > { %546 = vset.pattern.permute.xlu0 %v696_v0  ;;  %v228_v3 = vunpack.c.l.s4 %v697_v2  ;;  %v820_v9 = vld [vmem:[%s190_s29] sm:$0xff]  ;;  %vm239_vm0 = vcmask 1043456   ;;  %v698_v18 = vmov 1966171168   ;;  %s462_s24 = sshll.u32 %s807_s22, 1  ;;  %s475_s5 = sshll.u32 %s685_s15, 5 }
  0x2e   : > { %225 = vperm.xlu0 %546, %v222_v1   ;;  %v231_v6 = vshrl.u32 %v230_v4, 7  ;;  %v270_v19 = vunpack.c.l.s4 %v698_v18  ;;  %s217_s6 = scalar_lea.vmem [#allocation6], %s462_s24  ;;  %vm286_vm1 = vcmp.lt.s32.totalorder %v230_v4, 256  ;;  %s331_s10 = scalar_lea.hbm %s887_s3, %s475_s5 }
  0x2f   : > { %v229_v5 = vunpack.c.0.s8 %v228_v3  ;;  %s333_s7 = sshll.u32 %s217_s6, 4  ;;  %s301_s11 = scalar_lea.sflag [#allocation7], %s807_s22  ;;  %s334_s7 = int_to_ptr.vmem [resolvable:$true] %s333_s7 }
  0x30   : > { %v271_v24 = vunpack.c.0.s8 %v270_v19  ;;  %s583_s18 = scalar_lea.vmem %s334_s7, 32  ;;  %s699_s19 = smov [#allocation6]  }
  0x31   : > { %v232_v7 = vsub.s32 %v229_v5, %v231_v6  ;;  %p584_p8 = scmp.ne.s32.totalorder %s334_s7, %s583_s18  ;;  %s587_s21 = sshll.u32 %s699_s19, 4  ;;  %s588_s21 = int_to_ptr.vmem [resolvable:$false] %s587_s21 }
  0x32   : > { %v274_v29 = vsub.s32 %v271_v24, %v231_v6  ;;  %s589_s28 = scalar_lea.vmem %s588_s21, 64  ;;  %p590_p0 = scmp.lt.s32.totalorder %s334_s7, %s588_s21 }
  0x33   : > { %p585_p11 = pnand %p584_p8, %p772_p9  ;;  %p591_p1 = scmp.lt.s32.totalorder %s589_s28, %s583_s18 }
  0x35   : > { %p586_p12 = pneg %p585_p11  ;;  %p592_p2 = por %p591_p1, %p590_p0 }
  0x37   : > { %p593_p3 = pnand %p592_p2, %p586_p12 }
  0xa9   : > { %v226_v8 = vpop.permute.xlu0 %225 }
  0xaa   : > { %v233_v10 = vrot.slane %v226_v8, %v232_v7 }
  0xac   : > { %v235_v11 = vmul.f32 %v233_v10, %v820_v9 }
  0xae   : > { %v237_v12 = vcombine.high %v235_v11, %v235_v11  ;;  %v240_v13 = vsel %vm239_vm0, %v235_v11, 0.0 }
  0xaf   : > { %v241_v14 = vrot.slane %v240_v13, 4 }
  0xb0   : > { %v247_v15 = vsel %vm239_vm0, %v237_v12, 0.0 }
  0xb1   : > { %v242_v16 = vadd.f32 %v241_v14, %v240_v13  ;;  %v248_v17 = vrot.slane %v247_v15, 4 }
  0xb3   : > { %v243_v20 = vrot.slane %v242_v16, 2  ;;  %v249_v21 = vadd.f32 %v248_v17, %v247_v15 }
  0xb5   : > { %v244_v22 = vadd.f32 %v243_v20, %v242_v16  ;;  %v250_v23 = vrot.slane %v249_v21, 2 }
  0xb7   : > { %v245_v25 = vrot.slane %v244_v22, 1  ;;  %v251_v26 = vadd.f32 %v250_v23, %v249_v21 }
  0xb9   : > { %v246_v27 = vadd.f32 %v245_v25, %v244_v22  ;;  %v252_v28 = vrot.slane %v251_v26, 1 }
  0xbb   : > { %v253_v30 = vadd.f32 %v252_v28, %v251_v26  ;;  %v463_v31 = vmul.f32 -1.442695, %v246_v27 }
  0xbd   : > { %547 = vpow2.f32 %v463_v31  ;;  %v464_v32 = vmul.f32 -1.442695, %v253_v30  ;;  %v268_v33 = vcombine.low %v246_v27, %v253_v30 }
  0xbf   : > { %549 = vpow2.f32 %v464_v32  ;;  %v275_v34 = vrot.slane %v268_v33, %v274_v29 }
  0xc1   : > { %v282_v35 = vrot.slane %v275_v34, %v274_v29 }
  0xc3   : > { %288 = vst.msk [vmem:[%s217_s6] sm:$0x3] %vm286_vm1, %v282_v35 }
  0xc4   : > { %596 = shalt.err (!%p593_p3)
}
  0xc5   : > { %s597_s29 = scalar_lea.hbm %s331_s10, 32  ;;  %s601_s24 = scalar_lea.hbm %s887_s3, 64 }
  0xc6   : > { %p598_p5 = scmp.ne.s32.totalorder %s331_s10, %s597_s29  ;;  %p602_p10 = scmp.lt.s32.totalorder %s331_s10, %s887_s3 }
  0xc7   : > { %p603_p4 = scmp.lt.s32.totalorder %s601_s24, %s597_s29 }
  0xc8   : > { %p599_p6 = pnand %p598_p5, %p772_p9 }
  0xc9   : > { %p604_p13 = por %p603_p4, %p602_p10 }
  0xca   : > { %p600_p7 = pneg %p599_p6 }
  0xcc   : > { %p605_p8 = pnand %p604_p13, %p600_p7 }
  0xce   : > { %608 = shalt.err (!%p605_p8)
}
  0xcf   : > { %479 = dma.vmem_to_hbm [thread:$0]  (%p772_p9), %s334_s7, 32, %s331_s10, %s301_s11   ;;  %v548_v36 = vpop.eup %547 }
  0xd0   : > { %v260_v37 = vadd.f32 1.0, %v548_v36  ;;  %v550_v38 = vpop.eup %549  ;;  %s474_s8 = sshll.u32 %s685_s15, 7  ;;  %s210_s9 = scalar_lea.vmem [#allocation5], %s460_s23 }
  0xd1   : > { %v261_v39 = vadd.f32 1.0, %v550_v38  ;;  %s317_s18 = sshll.u32 %s210_s9, 4  ;;  %s315_s7 = scalar_lea.hbm %s886_s2, %s474_s8  ;;  %s318_s18 = int_to_ptr.vmem [resolvable:$true] %s317_s18 }
  0xd2   : > { %551 = vrcp.f32 %v260_v37  ;;  %s296_s10 = scalar_lea.sflag [#allocation4], %s807_s22  ;;  %s609_s11 = scalar_lea.vmem %s318_s18, 128 }
  0xd3   : > { %553 = vrcp.f32 %v261_v39  ;;  %p610_p11 = scmp.ne.s32.totalorder %s318_s18, %s609_s11  ;;  %s700_s28 = smov [#allocation5]  }
  0xd4   : > { %s613_s15 = sshll.u32 %s700_s28, 4  ;;  %s614_s15 = int_to_ptr.vmem [resolvable:$false] %s613_s15 }
  0xd5   : > { %p611_p12 = pnand %p610_p11, %p772_p9  ;;  %s615_s23 = scalar_lea.vmem %s614_s15, 256 }
  0xd6   : > { %p616_p1 = scmp.lt.s32.totalorder %s318_s18, %s614_s15  ;;  %p617_p2 = scmp.lt.s32.totalorder %s615_s23, %s609_s11 }
  0xd7   : > { %p612_p0 = pneg %p611_p12 }
  0xd8   : > { %p618_p3 = por %p617_p2, %p616_p1 }
  0xda   : > { %p619_p5 = pnand %p618_p3, %p612_p0 }
  0xdf   : > { %v552_v40 = vpop.eup %551 }
  0xe0   : > { %v554_v41 = vpop.eup %553 }
  0xe1   : > { %v291_v42 = vcombine.low %v552_v40, %v554_v41 }
  0xe3   : > { %v293_v43 = vmul.f32 %v291_v42, %v820_v9 }
  0xe5   : > { %294 = vst [vmem:[%s210_s9] sm:$0xff] %v293_v43 }
  0xe6   : > { %622 = shalt.err (!%p619_p5)
}
  0xe7   : > { %s623_s29 = scalar_lea.hbm %s315_s7, 128  ;;  %s627_s4 = scalar_lea.hbm %s886_s2, 256 }
  0xe8   : > { %p624_p6 = scmp.ne.s32.totalorder %s315_s7, %s623_s29  ;;  %p628_p4 = scmp.lt.s32.totalorder %s315_s7, %s886_s2 }
  0xe9   : > { %p629_p13 = scmp.lt.s32.totalorder %s627_s4, %s623_s29 }
  0xea   : > { %p625_p7 = pnand %p624_p6, %p772_p9 }
  0xeb   : > { %p630_p8 = por %p629_p13, %p628_p4 }
  0xec   : > { %p626_p10 = pneg %p625_p7 }
  0xee   : > { %p631_p11 = pnand %p630_p8, %p626_p10 }
  0xf0   : > { %634 = shalt.err (!%p631_p11)
}
  0xf1   : > { %478 = dma.vmem_to_hbm [thread:$0]  (%p772_p9), %s318_s18, 128, %s315_s7, %s296_s10  }
  0xf2 PF: > { %s345_s6 = sand.u32 1, %s673_s12   ;;  %p893_p12 = scmp.ne.s32.totalorder %s891_s27, 0 }
  0xf3   : > { %p894_p0 = scmp.ge.s32.totalorder %s693_s17, 2  ;;  %s346_s8 = scalar_lea.sflag [#allocation4], %s345_s6 }
  0xf5   : > { %p487_p1 = pnand %p894_p0, %p893_p12 }
  0xf7   : > { %p488_p2 = pneg %p487_p1 }
  0xf9   : > { %664 = dma.done.wait (%p488_p2), %s346_s8, 128  }
  0xfa   : > { %666 = vsyncadd (%p488_p2), %s346_s8, 4294967168  ;;  %s355_s9 = scalar_lea.sflag [#allocation7], %s345_s6 }
  0xfb   : > { %668 = dma.done.wait (%p488_p2), %s355_s9, 32  }
  0xfc   : > { %670 = vsyncadd (%p488_p2), %s355_s9, 4294967264  ;;  %s23_s17 = sadd.s32 1, %s693_s17   ;;  %s895_s12 = smov %s677_s13 }
  0xfd   : > { %p20_p3 = scmp.ge.s32.totalorder %s23_s17, 4   ;;  %s896_s13 = smov %s681_s14 }
  0xfe   : > { %s897_s14 = smov %s777_s26  ;;  %s898_s15 = smov %s689_s16 }
  0xff   : > { %s899_s16 = smov %s901_s20  ;;  %22 = sbr.rel (!%p20_p3) target bundleno = 8 (0x8), region = 90 }
 0x104   :  { %360 = vsyncpa [#allocation3], 1 }
 0x105   :  { %362 = vsyncpa [#allocation3 + $0x1], 1 }
 0x106   :  { %363 = vsyncpa [#allocation4], 1 }
 0x107   :  { %365 = vsyncpa [#allocation4 + $0x1], 1 }
 0x108   :  { %366 = vsyncpa [#allocation7], 1 }
 0x109   :  { %368 = vsyncpa [#allocation7 + $0x1], 1 }

</bundles_post_ra>
